<compile_context>
chip_gen: v7x
topology: tpu7x:2x2x1
jax: 0.10.0
libtpu: 0.0.40
codegen_flags: <defaults>
</compile_context>

<pallas_src>
from functools import partial

import jax
import jax.numpy as jnp
from jax.experimental import pallas as pl
from jax.experimental.pallas import tpu as pltpu


# ----------------------------- Pallas kernel --------------------------------

def _channel_attention_kernel(x_ref, w1_ref, b1_ref, w2_ref, b2_ref, o_ref, *,
                              inv_hw):
    """One batch element per grid step.

    x_ref : (1, C, HW)  image slab, lane axis = HW (lane-dense)
    w1_ref: (Csq, C)    b1_ref: (Csq, 1)     (squeeze 1x1 conv)
    w2_ref: (C, Csq)    b2_ref: (C, 1)       (excite 1x1 conv)
    o_ref : (1, C, HW)
    """
    x = x_ref[0]                                              # (C, HW) f32

    # AdaptiveAvgPool2d(1): mean over spatial dims (lane-axis reduce, XLU).
    pooled = jnp.sum(x, axis=1, keepdims=True) * inv_hw       # (C, 1)

    # Squeeze/excite MLP.  Weights live in VMEM; these mat-vecs are tiny and
    # off the memory-bound path, so f32 operands are fine.
    h1 = jnp.dot(w1_ref[...], pooled,
                 preferred_element_type=jnp.float32) + b1_ref[...]   # (Csq, 1)
    h1 = jnp.maximum(h1, 0.0)                                        # ReLU
    h2 = jnp.dot(w2_ref[...], h1,
                 preferred_element_type=jnp.float32) + b2_ref[...]   # (C, 1)
    scale = jax.nn.sigmoid(h2)                                       # (C, 1)

    # Rescale: broadcast (C,1) along lanes, single unmasked lane-dense store.
    o_ref[0] = x * scale


# ------------------------------- wrapper -------------------------------------

def channel_attention(x_nchw, w1, b1, w2, b2):
    """x_nchw: (B, C, H, W) float32 (PyTorch NCHW layout).

    w1: (Csq, C, 1, 1), b1: (Csq,), w2: (C, Csq, 1, 1), b2: (C,)  (torch Conv2d
    1x1 weights)."""
    B, C, H, W = x_nchw.shape
    HW = H * W
    Csq = w1.shape[0]

    x2 = x_nchw.reshape(B, C, HW).astype(jnp.float32)
    w1m = w1.reshape(Csq, C).astype(jnp.float32)
    b1m = b1.reshape(Csq, 1).astype(jnp.float32)
    w2m = w2.reshape(C, Csq).astype(jnp.float32)
    b2m = b2.reshape(C, 1).astype(jnp.float32)

    out = pl.pallas_call(
        partial(_channel_attention_kernel, inv_hw=1.0 / float(HW)),
        grid=(B,),
        in_specs=[
            pl.BlockSpec((1, C, HW), lambda b: (b, 0, 0)),   # x slab per batch
            pl.BlockSpec((Csq, C),   lambda b: (0, 0)),      # W1 (resident)
            pl.BlockSpec((Csq, 1),   lambda b: (0, 0)),      # b1
            pl.BlockSpec((C, Csq),   lambda b: (0, 0)),      # W2
            pl.BlockSpec((C, 1),     lambda b: (0, 0)),      # b2
        ],
        out_specs=pl.BlockSpec((1, C, HW), lambda b: (b, 0, 0)),
        out_shape=jax.ShapeDtypeStruct((B, C, HW), jnp.float32),
        compiler_params=pltpu.CompilerParams(
            dimension_semantics=("parallel",),
        ),
    )(x2, w1m, b1m, w2m, b2m)

    return out.reshape(B, C, H, W)


# ------------------------- pure-JAX reference --------------------------------

def channel_attention_ref(x, w1, b1, w2, b2):
    B, C, H, W = x.shape
    Csq = w1.shape[0]
    pooled = jnp.mean(x, axis=(2, 3))                             # (B, C)
    h1 = jax.nn.relu(pooled @ w1.reshape(Csq, C).T + b1[None, :])
    h2 = h1 @ w2.reshape(C, Csq).T + b2[None, :]
    y = jax.nn.sigmoid(h2)                                        # (B, C)
    return x * y[:, :, None, None]


# ---------------------------------- main -------------------------------------

if __name__ == "__main__":
    key = jax.random.PRNGKey(0)
    B, C, H, W = 2, 64, 16, 16           # num_feat=64, squeeze_factor=16 -> Csq=4
    squeeze_factor = 16
    Csq = C // squeeze_factor

    kx, k1, k2, k3, k4 = jax.random.split(key, 5)
    x = jax.random.normal(kx, (B, C, H, W), dtype=jnp.float32)
    w1 = 0.1 * jax.random.normal(k1, (Csq, C, 1, 1), dtype=jnp.float32)
    b1 = 0.1 * jax.random.normal(k2, (Csq,), dtype=jnp.float32)
    w2 = 0.1 * jax.random.normal(k3, (C, Csq, 1, 1), dtype=jnp.float32)
    b2 = 0.1 * jax.random.normal(k4, (C,), dtype=jnp.float32)

    fwd = jax.jit(channel_attention)
    out = jax.block_until_ready(fwd(x, w1, b1, w2, b2))

    ref = channel_attention_ref(x, w1, b1, w2, b2)
    assert out.shape == (B, C, H, W)
    assert bool(jnp.all(jnp.isfinite(out)))
    assert bool(jnp.allclose(out, ref, atol=1e-5, rtol=1e-5))
    print("KERNEL_OK")
</pallas_src>

<mosaic_0001>
module attributes {stable_mosaic.version = 11 : i64} {
  func.func @_channel_attention_kernel(%arg0: i32, %arg1: memref<1x64x256xf32, #tpu.memory_space<vmem>>, %arg2: memref<4x64xf32, #tpu.memory_space<vmem>>, %arg3: memref<4x1xf32, #tpu.memory_space<vmem>>, %arg4: memref<64x4xf32, #tpu.memory_space<vmem>>, %arg5: memref<64x1xf32, #tpu.memory_space<vmem>>, %arg6: memref<1x64x256xf32, #tpu.memory_space<vmem>>) attributes {dimension_semantics = [#tpu.dimension_semantics<parallel>], iteration_bounds = array<i64: 2>, scalar_prefetch = 0 : i64, scratch_operands = 0 : i64, tpu.core_type = #tpu.core_type<tc>, window_params = [{transform_indices = @transform_0, window_bounds = array<i64: 1, 64, 256>}, {pipeline_mode = #tpu.pipeline_mode<synchronous>, transform_indices = @transform_1, window_bounds = array<i64: 4, 64>}, {pipeline_mode = #tpu.pipeline_mode<synchronous>, transform_indices = @transform_2, window_bounds = array<i64: 4, 1>}, {pipeline_mode = #tpu.pipeline_mode<synchronous>, transform_indices = @transform_3, window_bounds = array<i64: 64, 4>}, {pipeline_mode = #tpu.pipeline_mode<synchronous>, transform_indices = @transform_4, window_bounds = array<i64: 64, 1>}, {transform_indices = @transform_5, window_bounds = array<i64: 1, 64, 256>}]} {
    %c0 = arith.constant 0 : index
    %c0_0 = arith.constant 0 : index
    %c0_1 = arith.constant 0 : index
    %0 = vector.load %arg1[%c0, %c0_0, %c0_1] : memref<1x64x256xf32, #tpu.memory_space<vmem>>, vector<1x64x256xf32>
    %1 = vector.shape_cast %0 : vector<1x64x256xf32> to vector<64x256xf32>
    %cst = arith.constant dense<0.000000e+00> : vector<64xf32>
    %2 = vector.multi_reduction <add>, %1, %cst [1] : vector<64x256xf32> to vector<64xf32>
    %3 = vector.shape_cast %2 : vector<64xf32> to vector<64x1xf32>
    %cst_2 = arith.constant 3.906250e-03 : f32
    %4 = vector.broadcast %cst_2 : f32 to vector<64x1xf32>
    %5 = arith.mulf %3, %4 : vector<64x1xf32>
    %c0_3 = arith.constant 0 : index
    %c0_4 = arith.constant 0 : index
    %6 = vector.load %arg2[%c0_3, %c0_4] : memref<4x64xf32, #tpu.memory_space<vmem>>, vector<4x64xf32>
    %cst_5 = arith.constant dense<0.000000e+00> : vector<4x1xf32>
    %7 = tpu.matmul %6, %5, %cst_5 {dimension_numbers = #tpu.dot_dimension_numbers<[1], [0], [0], [1], [0, 0, 1, 1], [], []>} : vector<4x64xf32>, vector<64x1xf32>, vector<4x1xf32> -> vector<4x1xf32>
    %c0_6 = arith.constant 0 : index
    %c0_7 = arith.constant 0 : index
    %8 = vector.load %arg3[%c0_6, %c0_7] : memref<4x1xf32, #tpu.memory_space<vmem>>, vector<4x1xf32>
    %9 = arith.addf %7, %8 : vector<4x1xf32>
    %cst_8 = arith.constant 0.000000e+00 : f32
    %10 = vector.broadcast %cst_8 : f32 to vector<4x1xf32>
    %11 = arith.maximumf %9, %10 : vector<4x1xf32>
    %c0_9 = arith.constant 0 : index
    %c0_10 = arith.constant 0 : index
    %12 = vector.load %arg4[%c0_9, %c0_10] : memref<64x4xf32, #tpu.memory_space<vmem>>, vector<64x4xf32>
    %cst_11 = arith.constant dense<0.000000e+00> : vector<64x1xf32>
    %13 = tpu.matmul %12, %11, %cst_11 {dimension_numbers = #tpu.dot_dimension_numbers<[1], [0], [0], [1], [0, 0, 1, 1], [], []>} : vector<64x4xf32>, vector<4x1xf32>, vector<64x1xf32> -> vector<64x1xf32>
    %c0_12 = arith.constant 0 : index
    %c0_13 = arith.constant 0 : index
    %14 = vector.load %arg5[%c0_12, %c0_13] : memref<64x1xf32, #tpu.memory_space<vmem>>, vector<64x1xf32>
    %15 = arith.addf %13, %14 : vector<64x1xf32>
    %16 = arith.negf %15 : vector<64x1xf32>
    %17 = math.exp %16 : vector<64x1xf32>
    %cst_14 = arith.constant 1.000000e+00 : f32
    %18 = vector.broadcast %cst_14 : f32 to vector<64x1xf32>
    %19 = arith.addf %18, %17 : vector<64x1xf32>
    %20 = arith.divf %18, %19 : vector<64x1xf32>
    %21 = vector.broadcast %20 : vector<64x1xf32> to vector<64x256xf32>
    %22 = arith.mulf %1, %21 : vector<64x256xf32>
    %c0_15 = arith.constant 0 : index
    %c0_16 = arith.constant 0 : index
    %c0_17 = arith.constant 0 : index
    %23 = vector.load %arg6[%c0_15, %c0_16, %c0_17] : memref<1x64x256xf32, #tpu.memory_space<vmem>>, vector<1x64x256xf32>
    %24 = vector.shape_cast %23 : vector<1x64x256xf32> to vector<64x256xf32>
    %25 = vector.shape_cast %22 : vector<64x256xf32> to vector<1x64x256xf32>
    tpu.vector_store %arg6[%c0_15, %c0_16, %c0_17], %25 {strides = array<i32>} : memref<1x64x256xf32, #tpu.memory_space<vmem>>, vector<1x64x256xf32>,
    return
  }
  func.func @transform_0(%arg0: i32) -> (i32, i32, i32) {
    %c0_i32 = arith.constant 0 : i32
    %c0_i32_0 = arith.constant 0 : i32
    %c0_i32_1 = arith.constant 0 : i32
    return %arg0, %c0_i32, %c0_i32_0 : i32, i32, i32
  }
  func.func @transform_1(%arg0: i32) -> (i32, i32) {
    %c0_i32 = arith.constant 0 : i32
    %c0_i32_0 = arith.constant 0 : i32
    %c0_i32_1 = arith.constant 0 : i32
    return %c0_i32, %c0_i32_0 : i32, i32
  }
  func.func @transform_2(%arg0: i32) -> (i32, i32) {
    %c0_i32 = arith.constant 0 : i32
    %c0_i32_0 = arith.constant 0 : i32
    %c0_i32_1 = arith.constant 0 : i32
    return %c0_i32, %c0_i32_0 : i32, i32
  }
  func.func @transform_3(%arg0: i32) -> (i32, i32) {
    %c0_i32 = arith.constant 0 : i32
    %c0_i32_0 = arith.constant 0 : i32
    %c0_i32_1 = arith.constant 0 : i32
    return %c0_i32, %c0_i32_0 : i32, i32
  }
  func.func @transform_4(%arg0: i32) -> (i32, i32) {
    %c0_i32 = arith.constant 0 : i32
    %c0_i32_0 = arith.constant 0 : i32
    %c0_i32_1 = arith.constant 0 : i32
    return %c0_i32, %c0_i32_0 : i32, i32
  }
  func.func @transform_5(%arg0: i32) -> (i32, i32, i32) {
    %c0_i32 = arith.constant 0 : i32
    %c0_i32_0 = arith.constant 0 : i32
    %c0_i32_1 = arith.constant 0 : i32
    return %arg0, %c0_i32, %c0_i32_0 : i32, i32, i32
  }
}

</mosaic_0001>

<bundles_post_ra>
// kernel: channel_attention.1
= control target key start
LH: loop header
LB: loop body
LE: loop exit
PB: predicated region body
PF: predicated region fallthrough
CT: control target
= control target key end

     0   :  { %s857_s18 = smov 0   ;;  %s1025_s0 = inlined_call_operand.vmem [shape: f32[2,64,256], index: 0, kind: input, shape index: {}]   ;;  %s1026_s1 = inlined_call_operand.vmem [shape: f32[4,64], index: 1, kind: input, shape index: {}]   ;;  %s1027_s2 = inlined_call_operand.vmem [shape: f32[4,1], index: 2, kind: input, shape index: {}]   ;;  %s1028_s3 = inlined_call_operand.vmem [shape: f32[64,4], index: 3, kind: input, shape index: {}]   ;;  %s1029_s4 = inlined_call_operand.vmem [shape: f32[64,1], index: 4, kind: input, shape index: {}]   ;;  %s1030_s5 = inlined_call_operand.vmem [shape: f32[2,64,256], index: 5, kind: output, shape index: {}]  }
   0x1 LB: > { %s675_s19 = sadd.s32 4294967295, %s821_s18   ;;  %p679_p0 = scmp.ge.s32.totalorder %s821_s18, 1  ;;  %s821_s18 = sphi %s857_s18, %s15_s18  }
   0x2   : > { %p187_p1 = scmp.lt.s32.totalorder %s821_s18, 3 }
   0x4   : > { %p188_p2 = pnand %p679_p0, %p187_p1 }
   0x5   : > { %p215_p3 = scmp.lt.s32.totalorder (!%p188_p2), %s675_s19, 1  ;;  %v823_v24 = vmov (!%p188_p2), 0.0|0.0   ;;  %vm824_vm0 = vmmov (!%p188_p2), 0   ;;  %v825_v25 = vmov (!%p188_p2), 0.0   ;;  %v273_v46 = vld [vmem:[%s1026_s1] sm:$0xf] (!%p188_p2) }
   0x6   : > { %191 = sbr.rel (%p188_p2) target bundleno = 798 (0x31e), region = 40  ;;  %757 = vmatprep.subr.bf16.mxu0 (!%p188_p2), %v823_v24  ;;  %740 = vmatprep.mubr.msk.f32.mxu0 (!%p188_p2), %vm824_vm0, %v825_v25  ;;  %vm275_vm1 = vcmask (!%p188_p2), 523264   ;;  %v350_v47 = vld [vmem:[%s1028_s3] sm:$0xff] (!%p188_p2)  ;;  %vm366_vm2 = vcmask (!%p188_p2), 31744   ;;  %vm391_vm3 = vcmask (!%p188_p2), 1043456   ;;  %v351_v53 = vld [vmem:[%s1028_s3 + $0x8] sm:$0xff] (!%p188_p2) }
   0x7   : > { %745 = vmatprep.mubr.msk.f32.mxu1 (!%p188_p2), %vm366_vm2, %v350_v47  ;;  %v274_v48 = vld [vmem:[%s1027_s2] sm:$0xf] (!%p188_p2)  ;;  %v352_v54 = vld [vmem:[%s1028_s3 + $0x10] sm:$0xff] (!%p188_p2)  ;;  %v353_v55 = vld [vmem:[%s1028_s3 + $0x18] sm:$0xff] (!%p188_p2)  ;;  %v826_v60 = vmov (!%p188_p2), 0  }
   0x8   : > { %v354_v56 = vld [vmem:[%s1028_s3 + $0x20] sm:$0xff] (!%p188_p2)  ;;  %v355_v57 = vld [vmem:[%s1028_s3 + $0x28] sm:$0xff] (!%p188_p2)  ;;  %v356_v58 = vld [vmem:[%s1028_s3 + $0x30] sm:$0xff] (!%p188_p2)  ;;  %782 = vset.pattern.permute.xlu1 (!%p188_p2), %v826_v60  ;;  %781 = vset.pattern.permute.xlu0 (!%p188_p2), %v826_v60 }
   0x9   : > { %v357_v59 = vld [vmem:[%s1028_s3 + $0x38] sm:$0xff] (!%p188_p2)  ;;  %v359_v61 = vld [vmem:[%s1029_s4 + $0x8] sm:$0xff] (!%p188_p2)  ;;  %v358_v62 = vld [vmem:[%s1029_s4] sm:$0xff] (!%p188_p2) }
   0xd   : > { %s1032_s19 = smov (!%p215_p3, %s675_s19), 1 }
   0xe   : > { %s704_s20 = sshll.u32 %s1032_s19, 7 }
   0xf   : > { %s219_s23 = scalar_lea.vmem %s1025_s0, %s704_s20  ;;  %s988_s15 = scalar_lea.vmem %s1030_s5, %s704_s20 }
  0x10   : > { %v873_v0 = vld [vmem:[%s219_s23 + $0x20] sm:$0xff]  ;;  %v875_v1 = vld [vmem:[%s219_s23 + $0x28] sm:$0xff]  ;;  %v883_v5 = vld [vmem:[%s219_s23 + $0x30] sm:$0xff] }
  0x11   : > { %v877_v2 = vld [vmem:[%s219_s23] sm:$0xff]  ;;  %v247_v3 = vadd.f32 %v875_v1, %v873_v0  ;;  %v881_v4 = vld [vmem:[%s219_s23 + $0x8] sm:$0xff]  ;;  %v885_v6 = vld [vmem:[%s219_s23 + $0x38] sm:$0xff] }
  0x12   : > { %v241_v7 = vadd.f32 %v881_v4, %v877_v2  ;;  %v889_v8 = vld [vmem:[%s219_s23 + $0x10] sm:$0xff]  ;;  %v891_v9 = vld [vmem:[%s219_s23 + $0x18] sm:$0xff]  ;;  %v250_v10 = vadd.f32 %v885_v6, %v883_v5  ;;  %v901_v14 = vld [vmem:[%s219_s23 + $0x40] sm:$0xff] }
  0x13   : > { %248 = vadd.xlane.f32.xlu1 %v247_v3  ;;  %v244_v11 = vadd.f32 %v891_v9, %v889_v8  ;;  %v897_v12 = vld [vmem:[%s219_s23 + $0x50] sm:$0xff]  ;;  %v899_v13 = vld [vmem:[%s219_s23 + $0x58] sm:$0xff]  ;;  %v903_v15 = vld [vmem:[%s219_s23 + $0x48] sm:$0xff] }
  0x14   : > { %242 = vadd.xlane.f32.xlu0 %v241_v7  ;;  %v256_v16 = vadd.f32 %v899_v13, %v897_v12  ;;  %v253_v17 = vadd.f32 %v903_v15, %v901_v14  ;;  %v909_v18 = vld [vmem:[%s219_s23 + $0x70] sm:$0xff]  ;;  %v911_v19 = vld [vmem:[%s219_s23 + $0x78] sm:$0xff]  ;;  %v913_v20 = vld [vmem:[%s219_s23 + $0x60] sm:$0xff] }
  0x15   : > { %v915_v21 = vld [vmem:[%s219_s23 + $0x68] sm:$0xff]  ;;  %v262_v22 = vadd.f32 %v911_v19, %v909_v18 }
  0x16   : > { %v259_v23 = vadd.f32 %v915_v21, %v913_v20 }
  0x17   : > { %251 = vadd.xlane.f32.xlu1 %v250_v10 }
  0x18   : > { %245 = vadd.xlane.f32.xlu0 %v244_v11  ;;  %v361_v11 = vld [vmem:[%s1029_s4 + $0x18] sm:$0xff] }
  0x1b   : > { %257 = vadd.xlane.f32.xlu1 %v256_v16 }
  0x1c   : > { %254 = vadd.xlane.f32.xlu0 %v253_v17  ;;  %v360_v17 = vld [vmem:[%s1029_s4 + $0x10] sm:$0xff] }
  0x1f   : > { %263 = vadd.xlane.f32.xlu1 %v262_v22 }
  0x20   : > { %260 = vadd.xlane.f32.xlu0 %v259_v23 }
  0xa0   : > { %v249_v26 = vpop.xlane.xlu1 %248 }
  0xa1   : > { %v243_v27 = vpop.xlane.xlu0 %242  ;;  %v267_v32 = vmul.f32 0.00390625, %v249_v26 }
  0xa2   : > { %v265_v30 = vmul.f32 0.00390625, %v243_v27  ;;  %v363_v27 = vld [vmem:[%s1029_s4 + $0x28] sm:$0xff] }
  0xa4   : > { %v252_v28 = vpop.xlane.xlu1 %251 }
  0xa5   : > { %v246_v29 = vpop.xlane.xlu0 %245  ;;  %v268_v33 = vmul.f32 0.00390625, %v252_v28 }
  0xa6   : > { %v266_v31 = vmul.f32 0.00390625, %v246_v29  ;;  %v362_v29 = vld [vmem:[%s1029_s4 + $0x20] sm:$0xff] }
  0xa7   : > { %v761_v39 = vpack.c.bf16 %v268_v33, %v267_v32 }
  0xa8   : > { %v758_v34 = vpack.c.bf16 %v266_v31, %v265_v30  ;;  %v258_v35 = vpop.xlane.xlu1 %257 }
  0xa9   : > { %v255_v36 = vpop.xlane.xlu0 %254  ;;  %v270_v37 = vmul.f32 0.00390625, %v258_v35 }
  0xaa   : > { %759 = vmatpush3.bf16.msra.mxu0 %v758_v34  ;;  %v269_v38 = vmul.f32 0.00390625, %v255_v36  ;;  %v364_v36 = vld [vmem:[%s1029_s4 + $0x30] sm:$0xff] }
  0xab   : > { %760 = vmatprep.subr.bf16.mxu0 %v823_v24 }
  0xac   : > { %v264_v40 = vpop.xlane.xlu1 %263  ;;  %v764_v42 = vpack.c.bf16 %v270_v37, %v269_v38 }
  0xad   : > { %v261_v41 = vpop.xlane.xlu0 %260  ;;  %v272_v43 = vmul.f32 0.00390625, %v264_v40  ;;  %v365_v40 = vld [vmem:[%s1029_s4 + $0x38] sm:$0xff] }
  0xae   : > { %762 = vmatpush3.bf16.msra.mxu0 %v761_v39  ;;  %v271_v44 = vmul.f32 0.00390625, %v261_v41 }
  0xaf   : > { %763 = vmatprep.subr.bf16.mxu0 %v823_v24 }
  0xb0   : > { %v767_v45 = vpack.c.bf16 %v272_v43, %v271_v44 }
  0xb2   : > { %765 = vmatpush3.bf16.msra.mxu0 %v764_v42 }
  0xb3   : > { %766 = vmatprep.subr.bf16.mxu0 %v823_v24 }
  0xb6   : > { %768 = vmatpush3.bf16.msra.mxu0 %v767_v45 }
  0xb9   : > { %741 = vmatmul.mubr.msk.f32.vlgmr.msra.gmra.mrb[0].mxu0 %vm275_vm1, %v273_v46 }
 0x18c   : > { %v345_v49 = vpop.f32.mrb[0].mxu0 }
 0x18d   : > { %v346_v50 = vadd.f32 %v345_v49, %v274_v48  ;;  %v742_v51 = vpop.f32.mrb[1].mxu0 }
 0x18f   : > { %v349_v52 = vmax.f32 %v346_v50, 0.0 }
 0x191   : > { %743 = vmatprep.subr.msk.mxu1 %vm391_vm3, %v349_v52 }
 0x192   : > { %744 = vmatpush3.msk.msra.mxu1 %vm391_vm3, %v349_v52 }
 0x193   : > { %746 = vmatmul.mubr.msk.f32.vlgmr.msra.gmra.mrb[0].mxu1 %vm366_vm2, %v351_v53 }
 0x194   : > { %748 = vmatprep.mubr.msk.f32.mxu1 %vm366_vm2, %v352_v54 }
 0x197   : > { %749 = vmatmul.mubr.msk.f32.gmra.mrb[2].mxu1 %vm366_vm2, %v353_v55 }
 0x198   : > { %751 = vmatprep.mubr.msk.f32.mxu1 %vm366_vm2, %v354_v56 }
 0x19b   : > { %752 = vmatmul.mubr.msk.f32.gmra.mrb[4].mxu1 %vm366_vm2, %v355_v57 }
 0x19c   : > { %754 = vmatprep.mubr.msk.f32.mxu1 %vm366_vm2, %v356_v58 }
 0x19f   : > { %755 = vmatmul.mubr.msk.f32.gmra.mrb[6].mxu1 %vm366_vm2, %v357_v59 }
 0x266   : > { %v747_v63 = vpop.f32.mrb[0].mxu1 }
 0x267   : > { %v467_v3 = vadd.f32 %v747_v63, %v359_v61  ;;  %v461_v7 = vpop.f32.mrb[1].mxu1 }
 0x268   : > { %v462_v10 = vadd.f32 %v461_v7, %v358_v62 }
 0x269   : > { %v695_v16 = vmul.f32 -1.442695, %v467_v3 }
 0x26a   : > { %v694_v22 = vmul.f32 -1.442695, %v462_v10  ;;  %v750_v23 = vpop.f32.mrb[2].mxu1 }
 0x26b   : > { %783 = vpow2.f32 %v695_v16  ;;  %v477_v24 = vadd.f32 %v750_v23, %v361_v11  ;;  %v471_v25 = vpop.f32.mrb[3].mxu1 }
 0x26c   : > { %785 = vpow2.f32 %v694_v22  ;;  %v472_v26 = vadd.f32 %v471_v25, %v360_v17 }
 0x26d   : > { %v697_v28 = vmul.f32 -1.442695, %v477_v24 }
 0x26e   : > { %v696_v30 = vmul.f32 -1.442695, %v472_v26  ;;  %v753_v31 = vpop.f32.mrb[4].mxu1 }
 0x26f   : > { %787 = vpow2.f32 %v697_v28  ;;  %v487_v32 = vadd.f32 %v753_v31, %v363_v27  ;;  %v481_v33 = vpop.f32.mrb[5].mxu1 }
 0x270   : > { %789 = vpow2.f32 %v696_v30  ;;  %v482_v34 = vadd.f32 %v481_v33, %v362_v29 }
 0x271   : > { %v699_v35 = vmul.f32 -1.442695, %v487_v32 }
 0x272   : > { %v756_v37 = vpop.f32.mrb[6].mxu1  ;;  %v698_v38 = vmul.f32 -1.442695, %v482_v34 }
 0x273   : > { %791 = vpow2.f32 %v699_v35  ;;  %v491_v39 = vpop.f32.mrb[7].mxu1  ;;  %v497_v47 = vadd.f32 %v756_v37, %v365_v40 }
 0x274   : > { %v492_v41 = vadd.f32 %v491_v39, %v364_v36  ;;  %793 = vpow2.f32 %v698_v38 }
 0x275   : > { %v784_v42 = vpop.eup %783  ;;  %v701_v51 = vmul.f32 -1.442695, %v497_v47 }
 0x276   : > { %v786_v43 = vpop.eup %785  ;;  %v525_v44 = vadd.f32 1.0, %v784_v42  ;;  %v700_v45 = vmul.f32 -1.442695, %v492_v41 }
 0x277   : > { %v524_v46 = vadd.f32 1.0, %v786_v43 }
 0x278   : > { %795 = vrcp.f32 %v525_v44 }
 0x279   : > { %v788_v48 = vpop.eup %787  ;;  %797 = vrcp.f32 %v524_v46 }
 0x27a   : > { %v790_v49 = vpop.eup %789  ;;  %v527_v50 = vadd.f32 1.0, %v788_v48  ;;  %799 = vpow2.f32 %v700_v45 }
 0x27b   : > { %v526_v52 = vadd.f32 1.0, %v790_v49 }
 0x27c   : > { %801 = vrcp.f32 %v527_v50 }
 0x27d   : > { %v792_v53 = vpop.eup %791  ;;  %803 = vpow2.f32 %v701_v51 }
 0x27e   : > { %v529_v54 = vadd.f32 1.0, %v792_v53  ;;  %805 = vrcp.f32 %v526_v52  ;;  %v794_v55 = vpop.eup %793 }
 0x27f   : > { %v528_v59 = vadd.f32 1.0, %v794_v55 }
 0x280   : > { %807 = vrcp.f32 %v529_v54 }
 0x281   : > { %809 = vrcp.f32 %v528_v59 }
 0x282   : > { %v796_v56 = vpop.eup %795 }
 0x283   : > { %v798_v57 = vpop.eup %797  ;;  %555 = vperm.xlu1 %782, %v796_v56  }
 0x284   : > { %v800_v58 = vpop.eup %799  ;;  %550 = vperm.xlu0 %781, %v798_v57  }
 0x285   : > { %v530_v61 = vadd.f32 1.0, %v800_v58 }
 0x286   : > { %v802_v60 = vpop.eup %801 }
 0x287   : > { %565 = vperm.xlu1 %782, %v802_v60   ;;  %v804_v62 = vpop.eup %803  ;;  %811 = vrcp.f32 %v530_v61 }
 0x288   : > { %v806_v63 = vpop.eup %805  ;;  %v531_v7 = vadd.f32 1.0, %v804_v62 }
 0x28a   : > { %v808_v3 = vpop.eup %807  ;;  %813 = vrcp.f32 %v531_v7 }
 0x28b   : > { %560 = vperm.xlu1 %782, %v806_v63   ;;  %v810_v10 = vpop.eup %809 }
 0x28f   : > { %575 = vperm.xlu1 %782, %v808_v3  }
 0x291   : > { %v812_v11 = vpop.eup %811 }
 0x293   : > { %570 = vperm.xlu1 %782, %v810_v10  }
 0x294   : > { %v814_v16 = vpop.eup %813 }
 0x297   : > { %580 = vperm.xlu1 %782, %v812_v11  }
 0x29b   : > { %585 = vperm.xlu1 %782, %v814_v16  }
 0x302   : > { %v556_v17 = vpop.permute.xlu1 %555 }
 0x303   : > { %v590_v22 = vmul.f32 %v556_v17, %v889_v8  ;;  %v591_v23 = vmul.f32 %v556_v17, %v891_v9  ;;  %v551_v24 = vpop.permute.xlu0 %550 }
 0x304   : > { %v588_v25 = vmul.f32 %v551_v24, %v877_v2  ;;  %v589_v26 = vmul.f32 %v551_v24, %v881_v4 }
 0x305   : > { %606 = vst [vmem:[%s988_s15 + $0x10] sm:$0xff] %v590_v22  ;;  %607 = vst [vmem:[%s988_s15 + $0x18] sm:$0xff] %v591_v23 }
 0x306   : > { %604 = vst [vmem:[%s988_s15] sm:$0xff] %v588_v25  ;;  %605 = vst [vmem:[%s988_s15 + $0x8] sm:$0xff] %v589_v26  ;;  %v566_v27 = vpop.permute.xlu1 %565 }
 0x307   : > { %v594_v28 = vmul.f32 %v566_v27, %v883_v5  ;;  %v595_v8 = vmul.f32 %v566_v27, %v885_v6 }
 0x309   : > { %610 = vst [vmem:[%s988_s15 + $0x30] sm:$0xff] %v594_v28  ;;  %611 = vst [vmem:[%s988_s15 + $0x38] sm:$0xff] %v595_v8 }
 0x30a   : > { %v561_v9 = vpop.permute.xlu1 %560 }
 0x30b   : > { %v592_v2 = vmul.f32 %v561_v9, %v873_v0  ;;  %v593_v4 = vmul.f32 %v561_v9, %v875_v1 }
 0x30d   : > { %608 = vst [vmem:[%s988_s15 + $0x20] sm:$0xff] %v592_v2  ;;  %609 = vst [vmem:[%s988_s15 + $0x28] sm:$0xff] %v593_v4 }
 0x30e   : > { %v576_v29 = vpop.permute.xlu1 %575 }
 0x30f   : > { %v598_v30 = vmul.f32 %v576_v29, %v897_v12  ;;  %v599_v5 = vmul.f32 %v576_v29, %v899_v13 }
 0x311   : > { %614 = vst [vmem:[%s988_s15 + $0x50] sm:$0xff] %v598_v30  ;;  %615 = vst [vmem:[%s988_s15 + $0x58] sm:$0xff] %v599_v5 }
 0x312   : > { %v571_v6 = vpop.permute.xlu1 %570 }
 0x313   : > { %v596_v31 = vmul.f32 %v571_v6, %v901_v14  ;;  %v597_v0 = vmul.f32 %v571_v6, %v903_v15 }
 0x315   : > { %612 = vst [vmem:[%s988_s15 + $0x40] sm:$0xff] %v596_v31  ;;  %613 = vst [vmem:[%s988_s15 + $0x48] sm:$0xff] %v597_v0 }
 0x316   : > { %v581_v1 = vpop.permute.xlu1 %580 }
 0x317   : > { %v600_v32 = vmul.f32 %v581_v1, %v913_v20  ;;  %v601_v33 = vmul.f32 %v581_v1, %v915_v21 }
 0x319   : > { %616 = vst [vmem:[%s988_s15 + $0x60] sm:$0xff] %v600_v32  ;;  %617 = vst [vmem:[%s988_s15 + $0x68] sm:$0xff] %v601_v33 }
 0x31a   : > { %v586_v12 = vpop.permute.xlu1 %585 }
 0x31b   : > { %v602_v13 = vmul.f32 %v586_v12, %v909_v18  ;;  %v603_v34 = vmul.f32 %v586_v12, %v911_v19 }
 0x31d   : > { %618 = vst [vmem:[%s988_s15 + $0x70] sm:$0xff] %v602_v13  ;;  %619 = vst [vmem:[%s988_s15 + $0x78] sm:$0xff] %v603_v34 }
 0x31e PF: > { %s15_s18 = sadd.s32 1, %s821_s18  }
 0x31f   : > { %p12_p4 = scmp.ge.s32.totalorder %s15_s18, 4  }
 0x321   :  { %14 = sbr.rel (!%p12_p4) target bundleno = 1 (0x1), region = 70 }

</bundles_post_ra>
